<compile_context>
chip_gen: v7x
topology: tpu7x:2x2x1
jax: 0.10.0
libtpu: 0.0.40
codegen_flags: <defaults>
</compile_context>

<pallas_src>
import functools

import jax
import jax.numpy as jnp
from jax import lax
from jax.experimental import pallas as pl
from jax.experimental.pallas import tpu as pltpu


def _final_layer_kernel(x_ref, shift_ref, scale1_ref, w_lin_ref, b_lin_ref,
                        o_ref, *, eps, inv_h):
    # --- LayerNorm (no affine, eps=1e-6, biased variance), one-pass f32 stats ---
    x = x_ref[0].astype(jnp.float32)                      # (tq, H)
    s1 = jnp.sum(x, axis=-1, keepdims=True)
    s2 = jnp.sum(x * x, axis=-1, keepdims=True)
    mean = s1 * inv_h
    var = s2 * inv_h - mean * mean
    xn = (x - mean) * lax.rsqrt(var + eps)

    # --- modulate: scale1 = (1 + scale) precomputed in the wrapper ---
    y = xn * scale1_ref[0] + shift_ref[0]                 # (tq, H) f32

    # --- final linear projection on the MXU: native-dtype operands, f32 acc ---
    y = y.astype(w_lin_ref.dtype)
    out = jnp.dot(y, w_lin_ref[...], preferred_element_type=jnp.float32)
    out = out + b_lin_ref[...]                             # bias already f32
    o_ref[0] = out.astype(o_ref.dtype)


def final_layer_forward(x, c, w_ada, b_ada, w_lin, b_lin, *, tile_q=512,
                        eps=1e-6):
    """x: (B, T, H); c: (B, C); w_ada: (C, 2H); b_ada: (2H,);
       w_lin: (H, O); b_lin: (O,)  ->  (B, T, O)"""
    B, T, H = x.shape
    O = w_lin.shape[1]

    # ---- adaLN modulation hoisted out of the kernel (tiny matmul, run once) ----
    cf = c.astype(jnp.float32)
    mod = jnp.dot(cf * jax.nn.sigmoid(cf), w_ada.astype(jnp.float32))
    mod = mod + b_ada.astype(jnp.float32)                  # (B, 2H) f32
    shift = mod[:, :H].reshape(B, 1, H)                    # (B, 1, H)
    scale1 = (mod[:, H:] + 1.0).reshape(B, 1, H)           # (B, 1, H)  = 1+scale

    # ---- row tile: multiple of the dtype's sublane packing; no padding of x ----
    itemsize = jnp.dtype(x.dtype).itemsize
    row_align = {4: 8, 2: 16, 1: 32}.get(itemsize, 8)
    t_ceil = ((T + row_align - 1) // row_align) * row_align
    tq = max(row_align, (min(tile_q, t_ceil) // row_align) * row_align)
    # v7x has 2 TensorCores: make sure the (parallel) grid has >= 2 steps.
    while B * pl.cdiv(T, tq) < 2 and tq > row_align:
        tq = max(row_align, (tq // 2 // row_align) * row_align)

    grid = (B, pl.cdiv(T, tq))

    b_lin_f32 = b_lin.astype(jnp.float32).reshape(1, O)

    # ---- explicit VMEM budget: 2x-buffered x/out tiles, weight, f32 temps ----
    out_dtype = x.dtype
    vmem_bytes = (2 * tq * H * itemsize                       # x double-buffer
                  + 2 * tq * O * jnp.dtype(out_dtype).itemsize  # out double-buffer
                  + 2 * H * O * jnp.dtype(w_lin.dtype).itemsize # resident weight
                  + 2 * O * 4
                  + 4 * tq * H * 4)                            # f32 temporaries
    vmem_limit = int(min(max(vmem_bytes + (2 << 20), 16 << 20), 48 << 20))

    kernel = functools.partial(_final_layer_kernel, eps=eps, inv_h=1.0 / H)

    out = pl.pallas_call(
        kernel,
        out_shape=jax.ShapeDtypeStruct((B, T, O), out_dtype),
        grid_spec=pl.GridSpec(
            grid=grid,
            in_specs=[
                pl.BlockSpec((1, tq, H), lambda b, t: (b, t, 0)),  # x tile
                pl.BlockSpec((1, 1, H),  lambda b, t: (b, 0, 0)),  # shift row
                pl.BlockSpec((1, 1, H),  lambda b, t: (b, 0, 0)),  # 1+scale row
                pl.BlockSpec((H, O),     lambda b, t: (0, 0)),     # linear weight
                pl.BlockSpec((1, O),     lambda b, t: (0, 0)),     # linear bias
            ],
            out_specs=pl.BlockSpec((1, tq, O), lambda b, t: (b, t, 0)),
        ),
        compiler_params=pltpu.CompilerParams(
            dimension_semantics=("parallel", "parallel"),
            vmem_limit_bytes=vmem_limit),
    )(x, shift, scale1, w_lin, b_lin_f32)

    return out


def final_layer_reference(x, c, w_ada, b_ada, w_lin, b_lin, eps=1e-6):
    """Pure-JAX reference matching the PyTorch module semantics."""
    silu_c = c * jax.nn.sigmoid(c)
    mod = silu_c @ w_ada + b_ada
    H = x.shape[-1]
    shift, scale = mod[:, :H], mod[:, H:]
    mean = jnp.mean(x, axis=-1, keepdims=True)
    var = jnp.mean((x - mean) ** 2, axis=-1, keepdims=True)
    xn = (x - mean) / jnp.sqrt(var + eps)
    y = xn * (1 + scale[:, None, :]) + shift[:, None, :]
    return y @ w_lin + b_lin


if __name__ == "__main__":
    # Small shapes consistent with the module:
    #   final_hidden_size=32, c_emb_size=16, patch_size=2, out_channels=4
    B, T = 2, 8
    HIDDEN, C_EMB = 32, 16
    PATCH, OUT_CH = 2, 4
    OUT = PATCH * PATCH * OUT_CH  # 16

    key = jax.random.PRNGKey(0)
    kx, kc, k1, k2, k3, k4 = jax.random.split(key, 6)

    x = jax.random.normal(kx, (B, T, HIDDEN), dtype=jnp.float32)
    c = jax.random.normal(kc, (B, C_EMB), dtype=jnp.float32)

    # Deterministic synthetic parameters (shapes from the module __init__).
    w_ada = jax.random.normal(k1, (C_EMB, 2 * HIDDEN), dtype=jnp.float32) * 0.05
    b_ada = jax.random.normal(k2, (2 * HIDDEN,), dtype=jnp.float32) * 0.05
    w_lin = jax.random.normal(k3, (HIDDEN, OUT), dtype=jnp.float32) * 0.05
    b_lin = jax.random.normal(k4, (OUT,), dtype=jnp.float32) * 0.05

    out = final_layer_forward(x, c, w_ada, b_ada, w_lin, b_lin)
    out = jax.block_until_ready(out)

    ref = final_layer_reference(x, c, w_ada, b_ada, w_lin, b_lin)
    assert out.shape == (B, T, OUT)
    assert jnp.allclose(out, ref, atol=1e-4, rtol=1e-4), "mismatch vs reference"

    print("KERNEL_OK")
</pallas_src>

<mosaic_0001>
module attributes {stable_mosaic.version = 11 : i64} {
  func.func @_final_layer_kernel(%arg0: i32, %arg1: i32, %arg2: memref<1x8x32xf32, #tpu.memory_space<vmem>>, %arg3: memref<1x1x32xf32, #tpu.memory_space<vmem>>, %arg4: memref<1x1x32xf32, #tpu.memory_space<vmem>>, %arg5: memref<32x16xf32, #tpu.memory_space<vmem>>, %arg6: memref<1x16xf32, #tpu.memory_space<vmem>>, %arg7: memref<1x8x16xf32, #tpu.memory_space<vmem>>) attributes {dimension_semantics = [#tpu.dimension_semantics<parallel>, #tpu.dimension_semantics<parallel>], iteration_bounds = array<i64: 2, 1>, scalar_prefetch = 0 : i64, scratch_operands = 0 : i64, tpu.core_type = #tpu.core_type<tc>, window_params = [{transform_indices = @transform_0, window_bounds = array<i64: 1, 8, 32>}, {transform_indices = @transform_1, window_bounds = array<i64: 1, 1, 32>}, {transform_indices = @transform_2, window_bounds = array<i64: 1, 1, 32>}, {pipeline_mode = #tpu.pipeline_mode<synchronous>, transform_indices = @transform_3, window_bounds = array<i64: 32, 16>}, {pipeline_mode = #tpu.pipeline_mode<synchronous>, transform_indices = @transform_4, window_bounds = array<i64: 1, 16>}, {transform_indices = @transform_5, window_bounds = array<i64: 1, 8, 16>}]} {
    %c0 = arith.constant 0 : index
    %c0_0 = arith.constant 0 : index
    %c0_1 = arith.constant 0 : index
    %0 = vector.load %arg2[%c0, %c0_0, %c0_1] : memref<1x8x32xf32, #tpu.memory_space<vmem>>, vector<1x8x32xf32>
    %1 = vector.shape_cast %0 : vector<1x8x32xf32> to vector<8x32xf32>
    %cst = arith.constant dense<0.000000e+00> : vector<8xf32>
    %2 = vector.multi_reduction <add>, %1, %cst [1] : vector<8x32xf32> to vector<8xf32>
    %3 = vector.shape_cast %2 : vector<8xf32> to vector<8x1xf32>
    %4 = arith.mulf %1, %1 : vector<8x32xf32>
    %cst_2 = arith.constant dense<0.000000e+00> : vector<8xf32>
    %5 = vector.multi_reduction <add>, %4, %cst_2 [1] : vector<8x32xf32> to vector<8xf32>
    %6 = vector.shape_cast %5 : vector<8xf32> to vector<8x1xf32>
    %cst_3 = arith.constant 3.125000e-02 : f32
    %7 = vector.broadcast %cst_3 : f32 to vector<8x1xf32>
    %8 = arith.mulf %3, %7 : vector<8x1xf32>
    %cst_4 = arith.constant 3.125000e-02 : f32
    %9 = vector.broadcast %cst_4 : f32 to vector<8x1xf32>
    %10 = arith.mulf %6, %9 : vector<8x1xf32>
    %11 = arith.mulf %8, %8 : vector<8x1xf32>
    %12 = arith.subf %10, %11 : vector<8x1xf32>
    %13 = vector.broadcast %8 : vector<8x1xf32> to vector<8x32xf32>
    %14 = arith.subf %1, %13 : vector<8x32xf32>
    %cst_5 = arith.constant 9.99999997E-7 : f32
    %15 = vector.broadcast %cst_5 : f32 to vector<8x1xf32>
    %16 = arith.addf %12, %15 : vector<8x1xf32>
    %17 = math.rsqrt %16 : vector<8x1xf32>
    %18 = vector.broadcast %17 : vector<8x1xf32> to vector<8x32xf32>
    %19 = arith.mulf %14, %18 : vector<8x32xf32>
    %c0_6 = arith.constant 0 : index
    %c0_7 = arith.constant 0 : index
    %c0_8 = arith.constant 0 : index
    %20 = vector.load %arg4[%c0_6, %c0_7, %c0_8] : memref<1x1x32xf32, #tpu.memory_space<vmem>>, vector<1x1x32xf32>
    %21 = vector.shape_cast %20 : vector<1x1x32xf32> to vector<1x32xf32>
    %22 = vector.broadcast %21 : vector<1x32xf32> to vector<8x32xf32>
    %23 = arith.mulf %19, %22 : vector<8x32xf32>
    %c0_9 = arith.constant 0 : index
    %c0_10 = arith.constant 0 : index
    %c0_11 = arith.constant 0 : index
    %24 = vector.load %arg3[%c0_9, %c0_10, %c0_11] : memref<1x1x32xf32, #tpu.memory_space<vmem>>, vector<1x1x32xf32>
    %25 = vector.shape_cast %24 : vector<1x1x32xf32> to vector<1x32xf32>
    %26 = vector.broadcast %25 : vector<1x32xf32> to vector<8x32xf32>
    %27 = arith.addf %23, %26 : vector<8x32xf32>
    %c0_12 = arith.constant 0 : index
    %c0_13 = arith.constant 0 : index
    %28 = vector.load %arg5[%c0_12, %c0_13] : memref<32x16xf32, #tpu.memory_space<vmem>>, vector<32x16xf32>
    %cst_14 = arith.constant dense<0.000000e+00> : vector<8x16xf32>
    %29 = tpu.matmul %27, %28, %cst_14 {dimension_numbers = #tpu.dot_dimension_numbers<[1], [0], [0], [1], [0, 0, 1, 1], [], []>} : vector<8x32xf32>, vector<32x16xf32>, vector<8x16xf32> -> vector<8x16xf32>
    %c0_15 = arith.constant 0 : index
    %c0_16 = arith.constant 0 : index
    %30 = vector.load %arg6[%c0_15, %c0_16] : memref<1x16xf32, #tpu.memory_space<vmem>>, vector<1x16xf32>
    %31 = vector.broadcast %30 : vector<1x16xf32> to vector<8x16xf32>
    %32 = arith.addf %29, %31 : vector<8x16xf32>
    %c0_17 = arith.constant 0 : index
    %c0_18 = arith.constant 0 : index
    %c0_19 = arith.constant 0 : index
    %33 = vector.load %arg7[%c0_17, %c0_18, %c0_19] : memref<1x8x16xf32, #tpu.memory_space<vmem>>, vector<1x8x16xf32>
    %34 = vector.shape_cast %33 : vector<1x8x16xf32> to vector<8x16xf32>
    %35 = vector.shape_cast %32 : vector<8x16xf32> to vector<1x8x16xf32>
    tpu.vector_store %arg7[%c0_17, %c0_18, %c0_19], %35 {strides = array<i32>} : memref<1x8x16xf32, #tpu.memory_space<vmem>>, vector<1x8x16xf32>,
    return
  }
  func.func @transform_0(%arg0: i32, %arg1: i32) -> (i32, i32, i32) {
    %c0_i32 = arith.constant 0 : i32
    %c0_i32_0 = arith.constant 0 : i32
    return %arg0, %arg1, %c0_i32 : i32, i32, i32
  }
  func.func @transform_1(%arg0: i32, %arg1: i32) -> (i32, i32, i32) {
    %c0_i32 = arith.constant 0 : i32
    %c0_i32_0 = arith.constant 0 : i32
    %c0_i32_1 = arith.constant 0 : i32
    return %arg0, %c0_i32, %c0_i32_0 : i32, i32, i32
  }
  func.func @transform_2(%arg0: i32, %arg1: i32) -> (i32, i32, i32) {
    %c0_i32 = arith.constant 0 : i32
    %c0_i32_0 = arith.constant 0 : i32
    %c0_i32_1 = arith.constant 0 : i32
    return %arg0, %c0_i32, %c0_i32_0 : i32, i32, i32
  }
  func.func @transform_3(%arg0: i32, %arg1: i32) -> (i32, i32) {
    %c0_i32 = arith.constant 0 : i32
    %c0_i32_0 = arith.constant 0 : i32
    %c0_i32_1 = arith.constant 0 : i32
    return %c0_i32, %c0_i32_0 : i32, i32
  }
  func.func @transform_4(%arg0: i32, %arg1: i32) -> (i32, i32) {
    %c0_i32 = arith.constant 0 : i32
    %c0_i32_0 = arith.constant 0 : i32
    %c0_i32_1 = arith.constant 0 : i32
    return %c0_i32, %c0_i32_0 : i32, i32
  }
  func.func @transform_5(%arg0: i32, %arg1: i32) -> (i32, i32, i32) {
    %c0_i32 = arith.constant 0 : i32
    %c0_i32_0 = arith.constant 0 : i32
    return %arg0, %arg1, %c0_i32 : i32, i32, i32
  }
}

</mosaic_0001>

<bundles_post_ra>
// kernel: tpu_custom_call.1
= control target key start
LH: loop header
LB: loop body
LE: loop exit
PB: predicated region body
PF: predicated region fallthrough
CT: control target
= control target key end

     0   :  { %10 = vsyncpa [#allocation3], 0  ;;  %s848_s0 = inlined_call_operand.vmem [shape: f32[2,8,32], index: 0, kind: input, shape index: {}]   ;;  %s849_s1 = inlined_call_operand.vmem [shape: f32[2,1,32], index: 1, kind: input, shape index: {}]   ;;  %s850_s2 = inlined_call_operand.vmem [shape: f32[2,1,32], index: 2, kind: input, shape index: {}]   ;;  %s851_s3 = inlined_call_operand.vmem [shape: f32[32,16], index: 3, kind: input, shape index: {}]   ;;  %s852_s4 = inlined_call_operand.vmem [shape: f32[1,16], index: 4, kind: input, shape index: {}]   ;;  %s853_s5 = inlined_call_operand.hbm [shape: f32[2,8,16], index: 5, kind: output, shape index: {}]  }
   0x1   :  { %12 = vsyncpa [#allocation3 + $0x1], 0  ;;  %s707_s18 = smov 0   ;;  %s709_s19 = smov 0  }
   0x2   :  { %s711_s20 = smov 0   ;;  %s713_s21 = smov 0  }
   0x3   :  { %s715_s22 = smov 0   ;;  %s717_s23 = smov 0  }
   0x4 LB: > { %s496_s24 = sadd.s32 4294967295, %s671_s23   ;;  %s497_s25 = sadd.s32 4294967294, %s671_s23   ;;  %s671_s23 = sphi %s717_s23, %s18_s23   ;;  %s667_s22 = sphi %s715_s22, %s860_s22   ;;  %s663_s21 = sphi %s713_s21, %s859_s21   ;;  %s659_s20 = sphi %s711_s20, %s858_s20   ;;  %s655_s19 = sphi %s709_s19, %s857_s19   ;;  %s651_s18 = sphi %s707_s18, %s856_s18  }
   0x5   : > { %s30_s26 = sadd.s32 1, %s667_s22  ;;  %s161_s27 = sadd.s32 1, %s659_s20 }
   0x6   : > { %p32_p0 = scmp.ge.s32.totalorder %s30_s26, 2  ;;  %p171_p1 = scmp.ne.s32.totalorder %s659_s20, %s655_s19 }
   0x7   : > { %p172_p2 = scmp.eq.s32.totalorder %s496_s24, 1  ;;  %p177_p3 = scmp.ne.s32.totalorder %s655_s19, %s651_s18 }
   0x8   : > { %s862_s26 = smov (%p32_p0, %s30_s26), 0  ;;  %p178_p5 = scmp.eq.s32.totalorder %s497_s25, 1 }
   0x9   : > { %p747_p4 = por %p172_p2, %p171_p1  ;;  %s156_s29 = ssub.s32 %s667_s22, %s862_s26 }
   0xa   : > { %p500_p6 = scmp.ge.s32.totalorder %s671_s23, 1  ;;  %p159_p7 = scmp.eq.s32.totalorder %s156_s29, 0 }
   0xb   : > { %p754_p8 = por %p178_p5, %p177_p3  ;;  %p224_p9 = scmp.lt.s32.totalorder %s671_s23, 3 }
   0xc   : > { %s760_s6 = scalar_select %p159_p7, %s659_s20, %s161_s27  }
   0xd   : > { %p225_p10 = pnand %p500_p6, %p224_p9 }
   0xe   : > { %p260_p11 = scmp.lt.s32.totalorder (!%p225_p10), %s663_s21, 1  ;;  %vm274_vm0 = vcmask (!%p225_p10), 261120   ;;  %v306_v4 = vld [vmem:[%s851_s3] sm:$0xff] (!%p225_p10)  ;;  %v307_v5 = vld [vmem:[%s851_s3 + $0x8] sm:$0xff] (!%p225_p10)  ;;  %v308_v6 = vld [vmem:[%s851_s3 + $0x10] sm:$0xff] (!%p225_p10)  ;;  %v673_v7 = vmov (!%p225_p10), 0.0|0.0  }
   0xf   : > { %228 = sbr.rel (%p225_p10) target bundleno = 425 (0x1a9), region = 40  ;;  %527 = vmatprep.subr.bf16.mxu0 (!%p225_p10), %v673_v7  ;;  %v528_v8 = vpack.c.bf16 (!%p225_p10), %v307_v5, %v306_v4  ;;  %v309_v9 = vld [vmem:[%s851_s3 + $0x18] sm:$0xff] (!%p225_p10)  ;;  %vm674_vm1 = vmmov (!%p225_p10), 0   ;;  %v675_v10 = vmov (!%p225_p10), 0.0   ;;  %s257_s12 = sand.u32 (!%p225_p10), 1, %s655_s19   ;;  %vm390_vm2 = vcmask (!%p225_p10), 130048  }
  0x10   : > { %524 = vmatprep.mubr.msk.f32.mxu0 (!%p225_p10), %vm674_vm1, %v675_v10  ;;  %v531_v11 = vpack.c.bf16 (!%p225_p10), %v309_v9, %v308_v6  ;;  %s501_s13 = sshll.u32 (!%p225_p10), %s257_s12, 3  ;;  %v505_v26 = vld [vmem:[%s852_s4] ss:$0 sm:$0xff] (!%p225_p10)  ;;  %s508_s16 = sshll.u32 (!%p225_p10), %s663_s21, 7 }
  0x11   : > { %529 = vmatpush3.bf16.msra.mxu0 (!%p225_p10), %v528_v8  ;;  %s259_s17 = scalar_lea.vmem (!%p225_p10), [#allocation2], %s501_s13  ;;  %s801_s27 = scalar_lea.hbm (!%p225_p10), %s853_s5, %s508_s16 }
  0x12   : > { %530 = vmatprep.subr.bf16.mxu0 (!%p225_p10), %v673_v7  ;;  %s407_s24 = sshll.u32 (!%p225_p10), %s259_s17, 4  ;;  %s393_s29 = scalar_lea.sflag (!%p225_p10), [#allocation3], %s257_s12  ;;  %s803_s24 = int_to_ptr.vmem [resolvable:$true] %s407_s24 }
  0x15   : > { %532 = vmatpush3.bf16.msra.mxu0 (!%p225_p10), %v531_v11 }
  0x16   : > { %s764_s7 = scalar_select %p260_p11, %s663_s21, 1 }
  0x17   : > { %s676_s21 = smov [#allocation2]  }
  0x18   : > { %s502_s8 = sshll.u32 %s764_s7, 3  ;;  %s597_s9 = sshll.u32 %s676_s21, 4  ;;  %s598_s9 = int_to_ptr.vmem [resolvable:$false] %s597_s9 }
  0x19   : > { %s266_s11 = scalar_lea.vmem %s848_s0, %s502_s8  ;;  %s272_s8 = scalar_lea.vmem %s850_s2, %s764_s7 }
  0x1a   : > { %v273_v0 = vld [vmem:[%s266_s11] sm:$0xff]  ;;  %s269_s11 = scalar_lea.vmem %s849_s1, %s764_s7  ;;  %s599_s10 = scalar_lea.vmem %s598_s9, 256 }
  0x1b   : > { %v275_v1 = vsel %vm274_vm0, %v273_v0, 0.0  ;;  %v278_v2 = vmul.f32 %v273_v0, %v273_v0  ;;  %v503_v21 = vld [vmem:[%s272_s8] ss:$0 sm:$0xff]  ;;  %s593_s8 = scalar_lea.vmem %s803_s24, 128  ;;  %p600_p1 = scmp.lt.s32.totalorder %s803_s24, %s598_s9 }
  0x1c   : > { %276 = vadd.xlane.f32.xlu0 %v275_v1  ;;  %v504_v23 = vld [vmem:[%s269_s11] ss:$0 sm:$0xff]  ;;  %p594_p12 = scmp.ne.s32.totalorder %s803_s24, %s593_s8  ;;  %p601_p2 = scmp.lt.s32.totalorder %s599_s10, %s593_s8 }
  0x1d   : > { %v279_v3 = vsel %vm274_vm0, %v278_v2, 0.0 }
  0x1e   : > { %p595_p13 = pnand %p594_p12, %p747_p4  ;;  %p602_p3 = por %p601_p2, %p600_p1 }
  0x20   : > { %280 = vadd.xlane.f32.xlu0 %v279_v3  ;;  %p596_p0 = pneg %p595_p13 }
  0x22   : > { %p603_p5 = pnand %p602_p3, %p596_p0 }
  0xa9   : > { %v277_v12 = vpop.xlane.xlu0 %276 }
  0xaa   : > { %v282_v13 = vmul.f32 0.03125, %v277_v12 }
  0xac   : > { %v284_v15 = vmul.f32 %v282_v13, %v282_v13  ;;  %v286_v19 = vsub.f32 %v273_v0, %v282_v13 }
  0xad   : > { %v281_v14 = vpop.xlane.xlu0 %280 }
  0xae   : > { %v283_v16 = vmul.f32 0.03125, %v281_v14 }
  0xb0   : > { %v285_v17 = vsub.f32 %v283_v16, %v284_v15 }
  0xb2   : > { %v287_v18 = vadd.f32 1e-06, %v285_v17 }
  0xb4   : > { %591 = vrsqrt.f32 %v287_v18 }
  0xbe   : > { %v592_v20 = vpop.eup %591 }
  0xbf   : > { %v289_v22 = vmul.f32 %v592_v20, %v286_v19 }
  0xc1   : > { %v297_v24 = vmul.f32 %v503_v21, %v289_v22 }
  0xc3   : > { %v305_v25 = vadd.f32 %v504_v23, %v297_v24 }
  0xc5   : > { %525 = vmatmul.mubr.msk.f32.vlgmr.msra.gmra.mrb[0].mxu0 %vm274_vm0, %v305_v25 }
 0x198   : > { %v386_v27 = vpop.f32.mrb[0].mxu0 }
 0x199   : > { %v387_v28 = vadd.f32 %v505_v26, %v386_v27  ;;  %v526_v29 = vpop.f32.mrb[1].mxu0 }
 0x19b   : > { %391 = vst.msk [vmem:[%s259_s17] sm:$0xff] %vm390_vm2, %v387_v28 }
 0x19c   : > { %606 = shalt.err (!%p603_p5)
}
 0x19d   : > { %s607_s11 = scalar_lea.hbm %s801_s27, 128  ;;  %s611_s14 = scalar_lea.hbm %s853_s5, 256 }
 0x19e   : > { %p608_p6 = scmp.ne.s32.totalorder %s801_s27, %s607_s11  ;;  %p612_p10 = scmp.lt.u32.totalorder %s801_s27, %s853_s5 }
 0x19f   : > { %p613_p11 = scmp.lt.u32.totalorder %s611_s14, %s607_s11  ;;  %p615_p13 = scmp.lt.u32.totalorder %s607_s11, %s801_s27 }
 0x1a0   : > { %p609_p7 = pnand %p608_p6, %p747_p4 }
 0x1a1   : > { %p614_p12 = por %p613_p11, %p612_p10 }
 0x1a2   : > { %p610_p9 = pneg %p609_p7 }
 0x1a3   : > { %p616_p0 = por %p615_p13, %p614_p12 }
 0x1a5   : > { %p617_p1 = pnand %p616_p0, %p610_p9 }
 0x1a7   : > { %620 = shalt.err (!%p617_p1)
}
 0x1a8   : > { %533 = dma.vmem_to_hbm [thread:$0]  (%p747_p4), %s803_s24, 128, %s801_s27, %s393_s29  }
 0x1a9 PF: > { %p539_p2 = scmp.ge.s32.totalorder %s671_s23, 2  ;;  %s419_s17 = sand.u32 1, %s651_s18  }
 0x1aa   : > { %s420_s7 = scalar_lea.sflag [#allocation3], %s419_s17 }
 0x1ab   : > { %p536_p3 = pnand %p539_p2, %p754_p8 }
 0x1ad   : > { %646 = dma.done.wait (!%p536_p3), %s420_s7, 128  }
 0x1ae   : > { %648 = vsyncadd (!%p536_p3), %s420_s7, 4294967168  ;;  %s18_s23 = sadd.s32 1, %s671_s23   ;;  %s856_s18 = smov %s655_s19 }
 0x1af   : > { %p15_p5 = scmp.ge.s32.totalorder %s18_s23, 4   ;;  %s857_s19 = smov %s659_s20 }
 0x1b0   : > { %s858_s20 = smov %s760_s6  ;;  %s859_s21 = smov %s667_s22 }
 0x1b1   : > { %s860_s22 = smov %s862_s26  ;;  %17 = sbr.rel (!%p15_p5) target bundleno = 4 (0x4), region = 81 }
 0x1b8   :  { %425 = vsyncpa [#allocation3], 1 }
 0x1b9   :  { %427 = vsyncpa [#allocation3 + $0x1], 1 }

</bundles_post_ra>
